<compile_context>
chip_gen: v5e
topology: v5e:2x2
jax: 0.10.0
libtpu: 0.0.40
codegen_flags: <defaults>
</compile_context>

<pallas_src>
import jax
import jax.numpy as jnp
from jax import lax
from jax.experimental import pallas as pl
from jax.experimental.pallas import tpu as pltpu

_IN = 784
_H0 = 58
_H1 = 57
_OUT = 10
_HPAD = 64   # padded hidden width (lane/sublane friendly)
_G = 16      # batch-tile granularity (bf16 sublane packing)


def _round_up(n, m):
    return ((n + m - 1) // m) * m


def _mlp_kernel(x_ref, w0_ref, b0_ref, w1_ref, b1_ref, w2_ref, o_ref):
    # x: [TM, 784]; weights stay in PyTorch [out, in] layout -> contract dim 1.
    dn = (((1,), (1,)), ((), ()))
    cdt = w0_ref.dtype  # compute dtype (bf16 fast path or f32 debug path)

    x = x_ref[...]

    # f0 Linear(784 -> 64pad) + f1 Sigmoid   (bias add + sigmoid in f32)
    h0 = lax.dot_general(x, w0_ref[...], dn, preferred_element_type=jnp.float32)
    h0 = jax.nn.sigmoid(h0 + b0_ref[...]).astype(cdt)

    # f2 Linear(64pad -> 64pad) + f3 Sigmoid  (padded input cols of W1 are zero)
    h1 = lax.dot_general(h0, w1_ref[...], dn, preferred_element_type=jnp.float32)
    h1 = jax.nn.sigmoid(h1 + b1_ref[...]).astype(cdt)

    # f4 Linear(64pad -> 10, no bias)         (padded input cols of W2 are zero)
    logits = lax.dot_general(h1, w2_ref[...], dn, preferred_element_type=jnp.float32)

    # f5 LogSoftmax(dim=1), numerically stable, in f32.
    m = jnp.max(logits, axis=-1, keepdims=True)
    shifted = logits - m
    lse = jnp.log(jnp.sum(jnp.exp(shifted), axis=-1, keepdims=True))
    o_ref[...] = (shifted - lse).astype(o_ref.dtype)


def prepare_params(params, dtype=jnp.bfloat16):
    """One-time parameter prep (call once, outside the hot path).

    Keeps PyTorch [out, in] layout, zero-pads hidden dims 58/57 -> 64, and
    casts the weight matrices to `dtype` (bf16 by default for the MXU path).
    Biases stay f32 (added after the f32-accumulated matmul).  Zero padding of
    the *input* columns of the next layer guarantees the sigmoid(0)=0.5
    activations on padded lanes contribute nothing.
    """
    w0, b0, w1, b1, w2 = [jnp.asarray(p, jnp.float32) for p in params]
    P = _HPAD
    w0p = jnp.zeros((P, _IN), jnp.float32).at[:_H0, :].set(w0).astype(dtype)   # [64, 784]
    b0p = jnp.zeros((1, P), jnp.float32).at[0, :_H0].set(b0)                   # [1, 64] f32
    w1p = jnp.zeros((P, P), jnp.float32).at[:_H1, :_H0].set(w1).astype(dtype)  # [64, 64]
    b1p = jnp.zeros((1, P), jnp.float32).at[0, :_H1].set(b1)                   # [1, 64] f32
    w2p = jnp.zeros((_OUT, P), jnp.float32).at[:, :_H1].set(w2).astype(dtype)  # [10, 64]
    return (w0p, b0p, w1p, b1p, w2p)


def _choose_tm(B, tm):
    tm = _round_up(max(_G, int(tm)), _G)
    tm = min(tm, _round_up(B, _G))           # don't over-tile tiny batches
    if B > _G:
        # >= 2 grid steps so the "parallel" batch axis spans both TCs on v7x.
        tm = min(tm, _round_up(pl.cdiv(B, 2), _G))
    return tm


def linear_sigmoid_7(x, prepared_params, *, tm=512):
    """x: [B, 1, 28, 28] (NCHW) or [B, 784]. Returns [B, 10] f32 log-probs."""
    w0p, b0p, w1p, b1p, w2p = prepared_params
    cdt = w0p.dtype
    B = x.shape[0]
    # NOTE: in a serving path feed x already in `cdt` (bf16) so this cast/copy
    # disappears; the wrapper accepts f32 inputs for convenience.
    x2d = x.reshape(B, _IN).astype(cdt)

    tm = _choose_tm(B, tm)

    # Only pad batches smaller than one granule; otherwise rely on Pallas'
    # masked handling of the ragged last block (no full-array pad copy in HBM).
    bp = max(B, _G)
    if bp != B:
        x2d = jnp.pad(x2d, ((0, bp - B), (0, 0)))
    grid_n = pl.cdiv(bp, tm)

    const = lambda arr: pl.BlockSpec(arr.shape, lambda i: (0, 0))

    out = pl.pallas_call(
        _mlp_kernel,
        out_shape=jax.ShapeDtypeStruct((bp, _OUT), jnp.float32),
        grid=(grid_n,),
        in_specs=[
            pl.BlockSpec((tm, _IN), lambda i: (i, 0)),   # x tile (double-buffered)
            const(w0p),                                  # weights/biases: VMEM-resident,
            const(b0p),                                  # constant index_map -> DMA'd once
            const(w1p),
            const(b1p),
            const(w2p),
        ],
        out_specs=pl.BlockSpec((tm, _OUT), lambda i: (i, 0)),
        compiler_params=pltpu.CompilerParams(
            dimension_semantics=("parallel",),           # megacore batch sharding (v7x)
        ),
    )(x2d, w0p, b0p, w1p, b1p, w2p)
    return out[:B] if bp != B else out


def init_params(key):
    """Deterministic init mimicking PyTorch nn.Linear default (uniform +-1/sqrt(fan_in))."""
    k0, k1, k2, k3, k4 = jax.random.split(key, 5)

    def unif(k, shape, fan_in):
        bound = 1.0 / jnp.sqrt(fan_in)
        return jax.random.uniform(k, shape, jnp.float32, -bound, bound)

    w0 = unif(k0, (_H0, _IN), float(_IN))   # PyTorch layout [out, in]
    b0 = unif(k1, (_H0,), float(_IN))
    w1 = unif(k2, (_H1, _H0), float(_H0))
    b1 = unif(k3, (_H1,), float(_H0))
    w2 = unif(k4, (_OUT, _H1), float(_H1))  # f4 has no bias
    return (w0, b0, w1, b1, w2)


def reference(x, params):
    """Pure-JAX f32 reference of the PyTorch forward."""
    w0, b0, w1, b1, w2 = params
    B = x.shape[0]
    h = x.reshape(B, _IN).astype(jnp.float32)
    h = jax.nn.sigmoid(h @ w0.T + b0)
    h = jax.nn.sigmoid(h @ w1.T + b1)
    logits = h @ w2.T
    return jax.nn.log_softmax(logits, axis=1)


if __name__ == "__main__":
    key = jax.random.PRNGKey(0)
    kx, kp = jax.random.split(key)

    # MNIST-like input: batch=2, NCHW [2, 1, 28, 28] (784 features after view).
    x = jax.random.normal(kx, (2, 1, 28, 28), dtype=jnp.float32)
    params = init_params(kp)
    ref = reference(x, params)

    # f32 debug path: proves the padding/tiling scheme is bit-exact.
    out_f32 = jax.block_until_ready(
        linear_sigmoid_7(x, prepare_params(params, jnp.float32)))
    assert out_f32.shape == (2, 10), out_f32.shape
    assert jnp.allclose(out_f32, ref, atol=1e-5, rtol=1e-5), "f32 mismatch vs reference"

    # bf16 fast path (the perf-optimized default): looser tolerance vs f32 ref.
    out_bf16 = jax.block_until_ready(linear_sigmoid_7(x, prepare_params(params)))
    assert out_bf16.shape == (2, 10), out_bf16.shape
    assert jnp.allclose(out_bf16, ref, atol=5e-2, rtol=5e-2), "bf16 mismatch vs reference"
    # Log-softmax rows should (log-)sum to 1.
    assert jnp.allclose(jnp.exp(out_bf16).sum(axis=1), 1.0, atol=1e-4)

    print("KERNEL_OK")
</pallas_src>

<mosaic_0001>
module attributes {stable_mosaic.version = 11 : i64} {
  func.func @_mlp_kernel(%arg0: i32, %arg1: memref<16x784xf32, #tpu.memory_space<vmem>>, %arg2: memref<64x784xf32, #tpu.memory_space<vmem>>, %arg3: memref<1x64xf32, #tpu.memory_space<vmem>>, %arg4: memref<64x64xf32, #tpu.memory_space<vmem>>, %arg5: memref<1x64xf32, #tpu.memory_space<vmem>>, %arg6: memref<10x64xf32, #tpu.memory_space<vmem>>, %arg7: memref<16x10xf32, #tpu.memory_space<vmem>>) attributes {dimension_semantics = [#tpu.dimension_semantics<parallel>], iteration_bounds = array<i64: 1>, scalar_prefetch = 0 : i64, scratch_operands = 0 : i64, tpu.core_type = #tpu.core_type<tc>, window_params = [{transform_indices = @transform_0, window_bounds = array<i64: 16, 784>}, {pipeline_mode = #tpu.pipeline_mode<synchronous>, transform_indices = @transform_1, window_bounds = array<i64: 64, 784>}, {pipeline_mode = #tpu.pipeline_mode<synchronous>, transform_indices = @transform_2, window_bounds = array<i64: 1, 64>}, {pipeline_mode = #tpu.pipeline_mode<synchronous>, transform_indices = @transform_3, window_bounds = array<i64: 64, 64>}, {pipeline_mode = #tpu.pipeline_mode<synchronous>, transform_indices = @transform_4, window_bounds = array<i64: 1, 64>}, {pipeline_mode = #tpu.pipeline_mode<synchronous>, transform_indices = @transform_5, window_bounds = array<i64: 10, 64>}, {transform_indices = @transform_6, window_bounds = array<i64: 16, 10>}]} {
    %c0 = arith.constant 0 : index
    %c0_0 = arith.constant 0 : index
    %0 = vector.load %arg1[%c0, %c0_0] : memref<16x784xf32, #tpu.memory_space<vmem>>, vector<16x784xf32>
    %c0_1 = arith.constant 0 : index
    %c0_2 = arith.constant 0 : index
    %1 = vector.load %arg2[%c0_1, %c0_2] : memref<64x784xf32, #tpu.memory_space<vmem>>, vector<64x784xf32>
    %cst = arith.constant dense<0.000000e+00> : vector<16x64xf32>
    %2 = tpu.matmul %0, %1, %cst {dimension_numbers = #tpu.dot_dimension_numbers<[1], [1], [0], [0], [0, 0, 1, 0], [], []>} : vector<16x784xf32>, vector<64x784xf32>, vector<16x64xf32> -> vector<16x64xf32>
    %c0_3 = arith.constant 0 : index
    %c0_4 = arith.constant 0 : index
    %3 = vector.load %arg3[%c0_3, %c0_4] : memref<1x64xf32, #tpu.memory_space<vmem>>, vector<1x64xf32>
    %4 = vector.broadcast %3 : vector<1x64xf32> to vector<16x64xf32>
    %5 = arith.addf %2, %4 : vector<16x64xf32>
    %6 = arith.negf %5 : vector<16x64xf32>
    %7 = math.exp %6 : vector<16x64xf32>
    %cst_5 = arith.constant 1.000000e+00 : f32
    %8 = vector.broadcast %cst_5 : f32 to vector<16x64xf32>
    %9 = arith.addf %8, %7 : vector<16x64xf32>
    %10 = arith.divf %8, %9 : vector<16x64xf32>
    %c0_6 = arith.constant 0 : index
    %c0_7 = arith.constant 0 : index
    %11 = vector.load %arg4[%c0_6, %c0_7] : memref<64x64xf32, #tpu.memory_space<vmem>>, vector<64x64xf32>
    %cst_8 = arith.constant dense<0.000000e+00> : vector<16x64xf32>
    %12 = tpu.matmul %10, %11, %cst_8 {dimension_numbers = #tpu.dot_dimension_numbers<[1], [1], [0], [0], [0, 0, 1, 0], [], []>} : vector<16x64xf32>, vector<64x64xf32>, vector<16x64xf32> -> vector<16x64xf32>
    %c0_9 = arith.constant 0 : index
    %c0_10 = arith.constant 0 : index
    %13 = vector.load %arg5[%c0_9, %c0_10] : memref<1x64xf32, #tpu.memory_space<vmem>>, vector<1x64xf32>
    %14 = vector.broadcast %13 : vector<1x64xf32> to vector<16x64xf32>
    %15 = arith.addf %12, %14 : vector<16x64xf32>
    %16 = arith.negf %15 : vector<16x64xf32>
    %17 = math.exp %16 : vector<16x64xf32>
    %cst_11 = arith.constant 1.000000e+00 : f32
    %18 = vector.broadcast %cst_11 : f32 to vector<16x64xf32>
    %19 = arith.addf %18, %17 : vector<16x64xf32>
    %20 = arith.divf %18, %19 : vector<16x64xf32>
    %c0_12 = arith.constant 0 : index
    %c0_13 = arith.constant 0 : index
    %21 = vector.load %arg6[%c0_12, %c0_13] : memref<10x64xf32, #tpu.memory_space<vmem>>, vector<10x64xf32>
    %cst_14 = arith.constant dense<0.000000e+00> : vector<16x10xf32>
    %22 = tpu.matmul %20, %21, %cst_14 {dimension_numbers = #tpu.dot_dimension_numbers<[1], [1], [0], [0], [0, 0, 1, 0], [], []>} : vector<16x64xf32>, vector<10x64xf32>, vector<16x10xf32> -> vector<16x10xf32>
    %cst_15 = arith.constant dense<0xFF800000> : vector<16xf32>
    %23 = vector.multi_reduction <maximumf>, %22, %cst_15 [1] : vector<16x10xf32> to vector<16xf32>
    %24 = vector.shape_cast %23 : vector<16xf32> to vector<16x1xf32>
    %25 = vector.broadcast %24 : vector<16x1xf32> to vector<16x10xf32>
    %26 = arith.subf %22, %25 : vector<16x10xf32>
    %27 = math.exp %26 : vector<16x10xf32>
    %cst_16 = arith.constant dense<0.000000e+00> : vector<16xf32>
    %28 = vector.multi_reduction <add>, %27, %cst_16 [1] : vector<16x10xf32> to vector<16xf32>
    %29 = vector.shape_cast %28 : vector<16xf32> to vector<16x1xf32>
    %30 = math.log %29 : vector<16x1xf32>
    %31 = vector.broadcast %30 : vector<16x1xf32> to vector<16x10xf32>
    %32 = arith.subf %26, %31 : vector<16x10xf32>
    %c0_17 = arith.constant 0 : index
    %c0_18 = arith.constant 0 : index
    %33 = vector.load %arg7[%c0_17, %c0_18] : memref<16x10xf32, #tpu.memory_space<vmem>>, vector<16x10xf32>
    tpu.vector_store %arg7[%c0_17, %c0_18], %32 {strides = array<i32>} : memref<16x10xf32, #tpu.memory_space<vmem>>, vector<16x10xf32>,
    return
  }
  func.func @transform_0(%arg0: i32) -> (i32, i32) {
    %c0_i32 = arith.constant 0 : i32
    %c0_i32_0 = arith.constant 0 : i32
    return %arg0, %c0_i32 : i32, i32
  }
  func.func @transform_1(%arg0: i32) -> (i32, i32) {
    %c0_i32 = arith.constant 0 : i32
    %c0_i32_0 = arith.constant 0 : i32
    %c0_i32_1 = arith.constant 0 : i32
    return %c0_i32, %c0_i32_0 : i32, i32
  }
  func.func @transform_2(%arg0: i32) -> (i32, i32) {
    %c0_i32 = arith.constant 0 : i32
    %c0_i32_0 = arith.constant 0 : i32
    %c0_i32_1 = arith.constant 0 : i32
    return %c0_i32, %c0_i32_0 : i32, i32
  }
  func.func @transform_3(%arg0: i32) -> (i32, i32) {
    %c0_i32 = arith.constant 0 : i32
    %c0_i32_0 = arith.constant 0 : i32
    %c0_i32_1 = arith.constant 0 : i32
    return %c0_i32, %c0_i32_0 : i32, i32
  }
  func.func @transform_4(%arg0: i32) -> (i32, i32) {
    %c0_i32 = arith.constant 0 : i32
    %c0_i32_0 = arith.constant 0 : i32
    %c0_i32_1 = arith.constant 0 : i32
    return %c0_i32, %c0_i32_0 : i32, i32
  }
  func.func @transform_5(%arg0: i32) -> (i32, i32) {
    %c0_i32 = arith.constant 0 : i32
    %c0_i32_0 = arith.constant 0 : i32
    %c0_i32_1 = arith.constant 0 : i32
    return %c0_i32, %c0_i32_0 : i32, i32
  }
  func.func @transform_6(%arg0: i32) -> (i32, i32) {
    %c0_i32 = arith.constant 0 : i32
    %c0_i32_0 = arith.constant 0 : i32
    return %arg0, %c0_i32 : i32, i32
  }
}

</mosaic_0001>

<bundles_post_ra>
// kernel: tpu_custom_call.1
= control target key start
LH: loop header
LB: loop body
LE: loop exit
PB: predicated region body
PF: predicated region fallthrough
CT: control target
= control target key end

     0   :  { %11 = vsyncpa [#allocation3], 0  ;;  %s879_s0 = inlined_call_operand.hbm [shape: f32[16,784], index: 0, kind: input, shape index: {}]   ;;  %s880_s1 = inlined_call_operand.hbm [shape: f32[64,784], index: 1, kind: input, shape index: {}]   ;;  %s881_s2 = inlined_call_operand.vmem [shape: f32[1,64], index: 2, kind: input, shape index: {}]   ;;  %s882_s3 = inlined_call_operand.hbm [shape: f32[64,64], index: 3, kind: input, shape index: {}]   ;;  %s883_s4 = inlined_call_operand.vmem [shape: f32[1,64], index: 4, kind: input, shape index: {}]   ;;  %s884_s5 = inlined_call_operand.hbm [shape: f32[10,64], index: 5, kind: input, shape index: {}]   ;;  %s885_s6 = inlined_call_operand.hbm [shape: f32[16,10], index: 6, kind: output, shape index: {}]  }
   0x1   :  { %12 = vsyncpa [#allocation6], 0 }
   0x2   :  { %13 = vsyncpa [#allocation9], 0 }
   0x3   :  { %14 = vsyncpa [#allocation4], 0  ;;  %s32_s23 = sshll.u32 %s880_s1, 4  ;;  %s773_s24 = smov [#allocation5]   ;;  %s33_s23 = int_to_ptr.hbm [resolvable:$true] %s32_s23 }
   0x4   :  { %s34_s25 = sshll.u32 %s773_s24, 4  ;;  %s19_s28 = sshll.u32 %s879_s0, 4  ;;  %s35_s25 = int_to_ptr.vmem [resolvable:$true] %s34_s25  ;;  %s20_s28 = int_to_ptr.hbm [resolvable:$true] %s19_s28 }
   0x5   :  { %s774_s29 = smov 896   ;;  %s775_s30 = smov 56  }
   0x6   :  { %40 = dma.hbm_to_vmem [thread:$0]  %s33_s23, 7168, %s35_s25, [#allocation6], %s774_s29, %s774_s29, %s775_s30  }
   0x7   :  { %s776_s7 = smov [#allocation2]   ;;  %s47_s11 = sshll.u32 %s882_s3, 4  ;;  %s48_s11 = int_to_ptr.hbm [resolvable:$true] %s47_s11 }
   0x8   :  { %s21_s8 = sshll.u32 %s776_s7, 4  ;;  %s777_s1 = smov [#allocation7]   ;;  %s22_s8 = int_to_ptr.vmem [resolvable:$true] %s21_s8 }
   0x9   :  { %27 = dma.hbm_to_vmem [thread:$0]  %s20_s28, 1792, %s22_s8, [#allocation3], %s774_s29, %s774_s29, %s775_s30  }
   0xa   :  { %s49_s12 = sshll.u32 %s777_s1, 4  ;;  %s62_s0 = sshll.u32 %s884_s5, 4  ;;  %s50_s12 = int_to_ptr.vmem [resolvable:$true] %s49_s12  ;;  %s63_s0 = int_to_ptr.hbm [resolvable:$true] %s62_s0 }
   0xb   :  { %s778_s15 = smov 128   ;;  %s779_s16 = smov 8  }
   0xc   :  { %55 = dma.hbm_to_vmem [thread:$0]  %s48_s11, 1024, %s50_s12, [#allocation6], %s778_s15, %s778_s15, %s779_s16  }
   0xd   :  { %s780_s17 = smov [#allocation8]  }
   0xe   :  { %s64_s18 = sshll.u32 %s780_s17, 4  ;;  %s65_s18 = int_to_ptr.vmem [resolvable:$true] %s64_s18 }
   0xf   :  { %70 = dma.hbm_to_vmem [thread:$0]  %s63_s0, 256, %s65_s18, [#allocation9], %s778_s15, %s778_s15, %s779_s16  }
  0x10   :  { %765 = dma.done.wait [#allocation3], 1792  }
  0x11   :  { %766 = vsyncadd [#allocation3], 4294965504 }
  0x12   :  { %767 = dma.done.wait [#allocation6], 8192  }
  0x13   :  { %768 = vsyncadd [#allocation6], 4294959104 }
  0x14   :  { %769 = dma.done.wait [#allocation9], 256  }
  0x15   :  { %770 = vsyncadd [#allocation9], 4294967040  ;;  %v150_v0 = vld [vmem:[#allocation5 + $0x188] sm:$0xff]  ;;  %v152_v1 = vld [vmem:[#allocation5 + $0x198] sm:$0xff]  ;;  %vm161_vm0 = vcmask 130048   ;;  %vm403_vm1 = vcmask 523264  }
  0x16   :  { %v151_v2 = vld [vmem:[#allocation5 + $0x190] sm:$0xff]  ;;  %200 = vmatpush.xpose.msra.mxu0 %v150_v0  ;;  %246 = vmatpush.xpose.msra.mxu2 %v152_v1  ;;  %v145_v4 = vld [vmem:[#allocation5 + $0x160] sm:$0xff]  ;;  %v144_v5 = vld [vmem:[#allocation5 + $0x158] sm:$0xff]  ;;  %s565_s23 = sshll.u32 %s885_s6, 4  ;;  %s566_s23 = int_to_ptr.hbm [resolvable:$true] %s565_s23 }
  0x17   :  { %223 = vmatpush.xpose.msra.mxu1 %v151_v2  ;;  %v143_v3 = vld [vmem:[#allocation5 + $0x150] sm:$0xff]  ;;  %v153_v6 = vld [vmem:[#allocation5 + $0x1a0] sm:$0xff]  ;;  %v136_v7 = vld [vmem:[#allocation5 + $0x118] sm:$0xff] }
  0x18   :  { %v138_v8 = vld [vmem:[#allocation5 + $0x128] sm:$0xff]  ;;  %269 = vmatpush.xpose.msra.mxu3 %v153_v6  ;;  %v137_v9 = vld [vmem:[#allocation5 + $0x120] sm:$0xff]  ;;  %v131_v12 = vld [vmem:[#allocation5 + $0xf0] sm:$0xff] }
  0x19   :  { %v146_v10 = vld [vmem:[#allocation5 + $0x168] sm:$0xff]  ;;  %v129_v11 = vld [vmem:[#allocation5 + $0xe0] sm:$0xff]  ;;  %v139_v14 = vld [vmem:[#allocation5 + $0x130] sm:$0xff] }
  0x1a   :  { %201 = vmatpush.xpose.msra.mxu0 %v143_v3  ;;  %247 = vmatpush.xpose.msra.mxu2 %v145_v4  ;;  %v130_v13 = vld [vmem:[#allocation5 + $0xe8] sm:$0xff]  ;;  %v124_v16 = vld [vmem:[#allocation5 + $0xb8] sm:$0xff]  ;;  %v123_v17 = vld [vmem:[#allocation5 + $0xb0] sm:$0xff] }
  0x1b   :  { %224 = vmatpush.xpose.msra.mxu1 %v144_v5  ;;  %v122_v15 = vld [vmem:[#allocation5 + $0xa8] sm:$0xff]  ;;  %v132_v18 = vld [vmem:[#allocation5 + $0xf8] sm:$0xff]  ;;  %v115_v19 = vld [vmem:[#allocation5 + $0x70] sm:$0xff] }
  0x1c   :  { %270 = vmatpush.xpose.msra.mxu3 %v146_v10  ;;  %v117_v20 = vld [vmem:[#allocation5 + $0x80] sm:$0xff]  ;;  %v116_v21 = vld [vmem:[#allocation5 + $0x78] sm:$0xff]  ;;  %v110_v24 = vld [vmem:[#allocation5 + $0x48] sm:$0xff] }
  0x1d   :  { %v125_v22 = vld [vmem:[#allocation5 + $0xc0] sm:$0xff]  ;;  %v108_v23 = vld [vmem:[#allocation5 + $0x38] sm:$0xff]  ;;  %v118_v26 = vld [vmem:[#allocation5 + $0x88] sm:$0xff] }
  0x1e   :  { %202 = vmatpush.xpose.msra.mxu0 %v136_v7  ;;  %248 = vmatpush.xpose.msra.mxu2 %v138_v8  ;;  %v109_v25 = vld [vmem:[#allocation5 + $0x40] sm:$0xff]  ;;  %v103_v28 = vld [vmem:[#allocation5 + $0x10] sm:$0xff]  ;;  %v154_v29 = vld [vmem:[#allocation5 + $0x1a8] sm:$0xff] }
  0x1f   :  { %225 = vmatpush.xpose.msra.mxu1 %v137_v9  ;;  %v101_v27 = vld [vmem:[#allocation5] sm:$0xff]  ;;  %v156_v30 = vld [vmem:[#allocation5 + $0x1b8] sm:$0xff]  ;;  %v102_v31 = vld [vmem:[#allocation5 + $0x8] sm:$0xff] }
  0x20   :  { %271 = vmatpush.xpose.msra.mxu3 %v139_v14  ;;  %v111_v32 = vld [vmem:[#allocation5 + $0x50] sm:$0xff]  ;;  %v89_v35 = vld [vmem:[#allocation2 + $0x10] sm:$0xff]  ;;  %v104_v38 = vld [vmem:[#allocation5 + $0x18] sm:$0xff] }
  0x21   :  { %v155_v33 = vld [vmem:[#allocation5 + $0x1b0] sm:$0xff]  ;;  %v149_v37 = vld [vmem:[#allocation5 + $0x180] sm:$0xff]  ;;  %v88_v39 = vld [vmem:[#allocation2 + $0x8] sm:$0xff] }
  0x22   :  { %203 = vmatpush.xpose.msra.mxu0 %v129_v11  ;;  %249 = vmatpush.xpose.msra.mxu2 %v131_v12  ;;  %v87_v34 = vld [vmem:[#allocation2] sm:$0xff]  ;;  %v148_v40 = vld [vmem:[#allocation5 + $0x178] sm:$0xff]  ;;  %v142_v42 = vld [vmem:[#allocation5 + $0x148] sm:$0xff] }
  0x23   :  { %226 = vmatpush.xpose.msra.mxu1 %v130_v13  ;;  %v147_v36 = vld [vmem:[#allocation5 + $0x170] sm:$0xff]  ;;  %v140_v41 = vld [vmem:[#allocation5 + $0x138] sm:$0xff]  ;;  %v90_v43 = vld [vmem:[#allocation2 + $0x18] sm:$0xff] }
  0x24   :  { %272 = vmatpush.xpose.msra.mxu3 %v132_v18  ;;  %v141_v44 = vld [vmem:[#allocation5 + $0x140] sm:$0xff]  ;;  %v94_v45 = vld [vmem:[#allocation2 + $0x38] sm:$0xff]  ;;  %v96_v46 = vld [vmem:[#allocation2 + $0x48] sm:$0xff] }
  0x25   :  { %v133_v47 = vld [vmem:[#allocation5 + $0x100] sm:$0xff]  ;;  %v135_v48 = vld [vmem:[#allocation5 + $0x110] sm:$0xff]  ;;  %v134_v50 = vld [vmem:[#allocation5 + $0x108] sm:$0xff] }
  0x26   :  { %204 = vmatpush.xpose.msra.mxu0 %v122_v15  ;;  %250 = vmatpush.xpose.msra.mxu2 %v124_v16  ;;  %v95_v49 = vld [vmem:[#allocation2 + $0x40] sm:$0xff]  ;;  %v126_v51 = vld [vmem:[#allocation5 + $0xc8] sm:$0xff]  ;;  %v128_v52 = vld [vmem:[#allocation5 + $0xd8] sm:$0xff] }
  0x27   :  { %227 = vmatpush.xpose.msra.mxu1 %v123_v17  ;;  %v97_v53 = vld [vmem:[#allocation2 + $0x50] sm:$0xff]  ;;  %v127_v54 = vld [vmem:[#allocation5 + $0xd0] sm:$0xff]  ;;  %v120_v57 = vld [vmem:[#allocation5 + $0x98] sm:$0xff] }
  0x28   :  { %273 = vmatpush.xpose.msra.mxu3 %v125_v22  ;;  %v119_v55 = vld [vmem:[#allocation5 + $0x90] sm:$0xff]  ;;  %v121_v56 = vld [vmem:[#allocation5 + $0xa0] sm:$0xff]  ;;  %v112_v58 = vld [vmem:[#allocation5 + $0x58] sm:$0xff] }
  0x29   :  { %v114_v59 = vld [vmem:[#allocation5 + $0x68] sm:$0xff]  ;;  %v113_v60 = vld [vmem:[#allocation5 + $0x60] sm:$0xff]  ;;  %v107_v62 = vld [vmem:[#allocation5 + $0x30] sm:$0xff] }
  0x2a   :  { %205 = vmatpush.xpose.msra.mxu0 %v115_v19  ;;  %251 = vmatpush.xpose.msra.mxu2 %v117_v20  ;;  %v105_v61 = vld [vmem:[#allocation5 + $0x20] sm:$0xff]  ;;  %v106_v63 = vld [vmem:[#allocation5 + $0x28] sm:$0xff]  ;;  %v91_v0 = vld [vmem:[#allocation2 + $0x20] sm:$0xff] }
  0x2b   :  { %228 = vmatpush.xpose.msra.mxu1 %v116_v21  ;;  %v93_v1 = vld [vmem:[#allocation2 + $0x30] sm:$0xff]  ;;  %v92_v2 = vld [vmem:[#allocation2 + $0x28] sm:$0xff]  ;;  %v98_v3 = vld [vmem:[#allocation2 + $0x58] sm:$0xff] }
  0x2c   :  { %274 = vmatpush.xpose.msra.mxu3 %v118_v26  ;;  %v100_v4 = vld [vmem:[#allocation2 + $0x68] sm:$0xff]  ;;  %v99_v5 = vld [vmem:[#allocation2 + $0x60] sm:$0xff]  ;;  %v396_v9 = vld [vmem:[#allocation7 + $0x28] sm:$0xff] }
  0x2d   :  { %v398_v6 = vld [vmem:[#allocation7 + $0x38] sm:$0xff]  ;;  %v397_v7 = vld [vmem:[#allocation7 + $0x30] sm:$0xff]  ;;  %v395_v12 = vld [vmem:[#allocation7 + $0x20] sm:$0xff] }
  0x2e   :  { %206 = vmatpush.xpose.msra.mxu0 %v108_v23  ;;  %252 = vmatpush.xpose.msra.mxu2 %v110_v24  ;;  %v619_v11 = vld [vmem:[%s881_s2] ss:$0 sm:$0xff]  ;;  %v394_v15 = vld [vmem:[#allocation7 + $0x18] sm:$0xff]  ;;  %v392_v24 = vld [vmem:[#allocation7 + $0x8] sm:$0xff] }
  0x2f   :  { %229 = vmatpush.xpose.msra.mxu1 %v109_v25  ;;  %v393_v19 = vld [vmem:[#allocation7 + $0x10] sm:$0xff] }
  0x30   :  { %275 = vmatpush.xpose.msra.mxu3 %v111_v32 }
  0x32   :  { %207 = vmatpush.xpose.msra.mxu0 %v101_v27  ;;  %253 = vmatpush.xpose.msra.mxu2 %v103_v28  ;;  %v391_v27 = vld [vmem:[#allocation7] sm:$0xff] }
  0x33   :  { %230 = vmatpush.xpose.msra.mxu1 %v102_v31 }
  0x34   :  { %276 = vmatpush.xpose.msra.mxu3 %v104_v38 }
  0x35   :  { %208 = vmatmul.f32.vlgmr.msra.gmra.mxu0 %v87_v34  ;;  %254 = vmatmul.f32.vlgmr.msra.gmra.mxu2 %v89_v35 }
  0x36   :  { %292 = vmatpush.xpose.msrb.mxu0 %v154_v29  ;;  %580 = vmatpush.xpose.msk.msrb.mxu2 %vm161_vm0, %v156_v30 }
  0x37   :  { %315 = vmatpush.xpose.msrb.mxu1 %v155_v33  ;;  %277 = vmatmul.f32.vlgmr.msra.gmra.mxu3 %v90_v43 }
  0x38   :  { %231 = vmatmul.f32.vlgmr.msra.gmra.mxu1 %v88_v39  ;;  %592 = vmatpush.xpose.msk.msrb.mxu3 %vm403_vm1, %v398_v6  ;;  %v495_v6 = vld [vmem:[#allocation8] sm:$0xff] }
  0x3a   :  { %293 = vmatpush.xpose.msrb.mxu0 %v147_v36  ;;  %581 = vmatpush.xpose.msk.msrb.mxu2 %vm161_vm0, %v149_v37 }
  0x3b   :  { %316 = vmatpush.xpose.msrb.mxu1 %v148_v40 }
  0x3c   :  { %593 = vmatpush.xpose.msk.msrb.mxu3 %vm403_vm1, %v397_v7  ;;  %v620_v7 = vld [vmem:[%s883_s4] ss:$0 sm:$0xff]  ;;  %s781_s4 = smov [#allocation10]  }
  0x3d   :  { %211 = vmatmul.f32.gmra.mxu0 %v94_v45  ;;  %257 = vmatmul.f32.gmra.mxu2 %v96_v46  ;;  %s563_s20 = sshll.u32 %s781_s4, 4  ;;  %s564_s20 = int_to_ptr.vmem [resolvable:$true] %s563_s20 }
  0x3e   :  { %294 = vmatpush.xpose.msrb.mxu0 %v140_v41  ;;  %582 = vmatpush.xpose.msk.msrb.mxu2 %vm161_vm0, %v142_v42 }
  0x3f   :  { %317 = vmatpush.xpose.msrb.mxu1 %v141_v44  ;;  %280 = vmatmul.f32.gmra.mxu3 %v97_v53 }
  0x40   :  { %234 = vmatmul.f32.gmra.mxu1 %v95_v49  ;;  %594 = vmatpush.xpose.msk.msrb.mxu3 %vm403_vm1, %v396_v9 }
  0x42   :  { %295 = vmatpush.xpose.msrb.mxu0 %v133_v47  ;;  %583 = vmatpush.xpose.msk.msrb.mxu2 %vm161_vm0, %v135_v48 }
  0x43   :  { %318 = vmatpush.xpose.msrb.mxu1 %v134_v50 }
  0x44   :  { %595 = vmatpush.xpose.msk.msrb.mxu3 %vm403_vm1, %v395_v12 }
  0x46   :  { %296 = vmatpush.xpose.msrb.mxu0 %v126_v51  ;;  %584 = vmatpush.xpose.msk.msrb.mxu2 %vm161_vm0, %v128_v52 }
  0x47   :  { %319 = vmatpush.xpose.msrb.mxu1 %v127_v54 }
  0x48   :  { %596 = vmatpush.xpose.msk.msrb.mxu3 %vm403_vm1, %v394_v15 }
  0x4a   :  { %297 = vmatpush.xpose.msrb.mxu0 %v119_v55  ;;  %585 = vmatpush.xpose.msk.msrb.mxu2 %vm161_vm0, %v121_v56 }
  0x4b   :  { %320 = vmatpush.xpose.msrb.mxu1 %v120_v57 }
  0x4c   :  { %597 = vmatpush.xpose.msk.msrb.mxu3 %vm403_vm1, %v393_v19 }
  0x4e   :  { %298 = vmatpush.xpose.msrb.mxu0 %v112_v58  ;;  %586 = vmatpush.xpose.msk.msrb.mxu2 %vm161_vm0, %v114_v59 }
  0x4f   :  { %321 = vmatpush.xpose.msrb.mxu1 %v113_v60 }
  0x50   :  { %598 = vmatpush.xpose.msk.msrb.mxu3 %vm403_vm1, %v392_v24 }
  0x52   :  { %299 = vmatpush.xpose.msrb.mxu0 %v105_v61  ;;  %587 = vmatpush.xpose.msk.msrb.mxu2 %vm161_vm0, %v107_v62 }
  0x53   :  { %322 = vmatpush.xpose.msrb.mxu1 %v106_v63 }
  0x54   :  { %599 = vmatpush.xpose.msk.msrb.mxu3 %vm403_vm1, %v391_v27 }
  0x55   :  { %300 = vmatmul.f32.vlgmr.msrb.gmra.mxu0 %v91_v0  ;;  %588 = vmatmul.msk.f32.vlgmr.msrb.gmra.mxu2 %vm161_vm0, %v93_v1 }
  0x56   :  { %323 = vmatmul.f32.vlgmr.msrb.gmra.mxu1 %v92_v2 }
  0x5d   :  { %303 = vmatmul.f32.gmra.mxu0 %v98_v3  ;;  %589 = vmatmul.msk.f32.gmra.mxu2 %vm161_vm0, %v100_v4 }
  0x5e   :  { %326 = vmatmul.f32.gmra.mxu1 %v99_v5  ;;  %v496_v5 = vld [vmem:[#allocation8 + $0x8] sm:$0x3] }
  0x5f   :  { %604 = vmatpush.xpose.msk.msra.mxu0 %vm403_vm1, %v496_v5  ;;  %608 = vmatpush.xpose.msk.msra.mxu1 %vm403_vm1, %v496_v5 }
  0x63   :  { %605 = vmatpush.xpose.msk.msra.mxu0 %vm403_vm1, %v495_v6  ;;  %609 = vmatpush.xpose.msk.msra.mxu1 %vm403_vm1, %v495_v6 }
  0xb2   :  { %v209_v8 = vpop.f32.mrf.mxu0 }
  0xb3   :  { %v210_v14 = vadd.f32 %v619_v11, %v209_v8 }
  0xb5   :  { %v232_v10 = vpop.f32.mrf.mxu1 }
  0xb6   :  { %v233_v17 = vadd.f32 %v232_v10, %v210_v14 }
  0xb8   :  { %v255_v13 = vpop.f32.mrf.mxu2 }
  0xb9   :  { %v256_v21 = vadd.f32 %v255_v13, %v233_v17 }
  0xba   :  { %v212_v16 = vpop.f32.mrf.mxu0  ;;  %v278_v20 = vpop.f32.mrf.mxu3 }
  0xbb   :  { %v213_v22 = vadd.f32 %v619_v11, %v212_v16  ;;  %v279_v25 = vadd.f32 %v278_v20, %v256_v21 }
  0xbd   :  { %v235_v18 = vpop.f32.mrf.mxu1 }
  0xbe   :  { %v236_v26 = vadd.f32 %v235_v18, %v213_v22 }
  0xc0   :  { %v258_v23 = vpop.f32.mrf.mxu2 }
  0xc1   :  { %v259_v31 = vadd.f32 %v258_v23, %v236_v26 }
  0xc2   :  { %v281_v32 = vpop.f32.mrf.mxu3 }
  0xc3   :  { %v282_v35 = vadd.f32 %v281_v32, %v259_v31 }
  0xd2   :  { %v301_v28 = vpop.f32.mrf.mxu0 }
  0xd3   :  { %v302_v29 = vadd.f32 %v301_v28, %v279_v25  ;;  %v324_v30 = vpop.f32.mrf.mxu1 }
  0xd5   :  { %v325_v33 = vadd.f32 %v324_v30, %v302_v29 }
  0xd8   :  { %v347_v34 = vpop.f32.mrf.mxu2 }
  0xd9   :  { %v348_v36 = vadd.f32 %v347_v34, %v325_v33 }
  0xda   :  { %v304_v37 = vpop.f32.mrf.mxu0 }
  0xdb   :  { %v590_v38 = vmul.f32 -1.442695, %v348_v36  ;;  %v305_v39 = vadd.f32 %v304_v37, %v282_v35  ;;  %v327_v40 = vpop.f32.mrf.mxu1 }
  0xdd   :  { %621 = vpow2.f32 %v590_v38  ;;  %v328_v41 = vadd.f32 %v327_v40, %v305_v39 }
  0xe0   :  { %v350_v42 = vpop.f32.mrf.mxu2 }
  0xe1   :  { %v351_v43 = vadd.f32 %v350_v42, %v328_v41 }
  0xe3   :  { %v622_v44 = vpop.eup %621  ;;  %v591_v45 = vmul.f32 -1.442695, %v351_v43 }
  0xe4   :  { %v359_v46 = vadd.f32 1.0, %v622_v44 }
  0xe5   :  { %623 = vpow2.f32 %v591_v45 }
  0xe6   :  { %625 = vrcp.f32 %v359_v46  ;;  %v372_v52 = vand.u32 2147483648, %v359_v46  ;;  %v370_v54 = vand.u32 2147483647, %v359_v46  ;;  %vm366_vm3 = vweird.f32 %v359_v46 }
  0xe8   :  { %v373_v57 = vor.u32 1.1754944e-38, %v372_v52  ;;  %vm371_vm5 = vcmp.eq.f32.partialorder %v370_v54, 8.507059e+37 }
  0xeb   :  { %v624_v47 = vpop.eup %623 }
  0xec   :  { %v626_v48 = vpop.eup %625  ;;  %v360_v49 = vadd.f32 1.0, %v624_v47 }
  0xed   :  { %v362_v50 = vmul.f32 %v626_v48, %v359_v46  ;;  %vm367_vm2 = vweird.f32 %v626_v48 }
  0xee   :  { %627 = vrcp.f32 %v360_v49  ;;  %vm368_vm4 = vmor %vm366_vm3, %vm367_vm2  ;;  %v387_v62 = vand.u32 2147483648, %v360_v49  ;;  %v385_v0 = vand.u32 2147483647, %v360_v49  ;;  %vm381_vm7 = vweird.f32 %v360_v49 }
  0xef   :  { %v363_v51 = vsub.f32 1.0, %v362_v50  ;;  %vm532_vm3 = vcmask 80896  }
  0xf0   :  { %v388_v2 = vor.u32 1.1754944e-38, %v387_v62  ;;  %vm386_vm9 = vcmp.eq.f32.partialorder %v385_v0, 8.507059e+37 }
  0xf1   :  { %v364_v53 = vmul.f32 %v626_v48, %v363_v51 }
  0xf3   :  { %v365_v55 = vadd.f32 %v626_v48, %v364_v53 }
  0xf4   :  { %v628_v56 = vpop.eup %627 }
  0xf5   :  { %v369_v58 = vsel %vm368_vm4, %v626_v48, %v365_v55  ;;  %v377_v59 = vmul.f32 %v628_v56, %v360_v49  ;;  %vm382_vm6 = vweird.f32 %v628_v56 }
  0xf6   :  { %v374_v60 = vsel %vm371_vm5, %v373_v57, %v369_v58  ;;  %vm383_vm8 = vmor %vm381_vm7, %vm382_vm6 }
  0xf7   :  { %600 = vmatmul.msk.f32.vlgmr.msrb.gmra.mxu3 %vm403_vm1, %v374_v60  ;;  %v378_v61 = vsub.f32 1.0, %v377_v59 }
  0xf9   :  { %v379_v63 = vmul.f32 %v628_v56, %v378_v61 }
  0xfb   :  { %v380_v1 = vadd.f32 %v628_v56, %v379_v63 }
  0xfd   :  { %v384_v3 = vsel %vm383_vm8, %v628_v56, %v380_v1 }
  0xfe   :  { %v389_v4 = vsel %vm386_vm9, %v388_v2, %v384_v3 }
  0xff   :  { %601 = vmatmul.msk.f32.gmra.mxu3 %vm403_vm1, %v389_v4 }
 0x17a   :  { %v451_v8 = vpop.f32.mrf.mxu3 }
 0x17b   :  { %v452_v9 = vadd.f32 %v620_v7, %v451_v8 }
 0x17d   :  { %v602_v10 = vmul.f32 -1.442695, %v452_v9 }
 0x17f   :  { %629 = vpow2.f32 %v602_v10 }
 0x182   :  { %v454_v11 = vpop.f32.mrf.mxu3 }
 0x183   :  { %v455_v12 = vadd.f32 %v620_v7, %v454_v11 }
 0x185   :  { %v630_v13 = vpop.eup %629  ;;  %v603_v14 = vmul.f32 -1.442695, %v455_v12 }
 0x186   :  { %v463_v15 = vadd.f32 1.0, %v630_v13 }
 0x187   :  { %631 = vpow2.f32 %v603_v14 }
 0x188   :  { %633 = vrcp.f32 %v463_v15  ;;  %v476_v21 = vand.u32 2147483648, %v463_v15  ;;  %v474_v23 = vand.u32 2147483647, %v463_v15  ;;  %vm470_vm11 = vweird.f32 %v463_v15 }
 0x18a   :  { %v477_v26 = vor.u32 1.1754944e-38, %v476_v21  ;;  %vm475_vm13 = vcmp.eq.f32.partialorder %v474_v23, 8.507059e+37 }
 0x18d   :  { %v632_v16 = vpop.eup %631 }
 0x18e   :  { %v634_v17 = vpop.eup %633  ;;  %v464_v18 = vadd.f32 1.0, %v632_v16 }
 0x18f   :  { %v466_v19 = vmul.f32 %v634_v17, %v463_v15  ;;  %vm471_vm10 = vweird.f32 %v634_v17 }
 0x190   :  { %635 = vrcp.f32 %v464_v18  ;;  %vm472_vm12 = vmor %vm470_vm11, %vm471_vm10  ;;  %v491_v31 = vand.u32 2147483648, %v464_v18  ;;  %v489_v33 = vand.u32 2147483647, %v464_v18  ;;  %vm485_vm15 = vweird.f32 %v464_v18 }
 0x191   :  { %v467_v20 = vsub.f32 1.0, %v466_v19 }
 0x192   :  { %v492_v35 = vor.u32 1.1754944e-38, %v491_v31  ;;  %vm490_vm2 = vcmp.eq.f32.partialorder %v489_v33, 8.507059e+37 }
 0x193   :  { %v468_v22 = vmul.f32 %v634_v17, %v467_v20 }
 0x195   :  { %v469_v24 = vadd.f32 %v634_v17, %v468_v22 }
 0x196   :  { %v636_v25 = vpop.eup %635 }
 0x197   :  { %v481_v27 = vmul.f32 %v636_v25, %v464_v18  ;;  %v473_v28 = vsel %vm472_vm12, %v634_v17, %v469_v24  ;;  %vm486_vm14 = vweird.f32 %v636_v25 }
 0x198   :  { %v478_v29 = vsel %vm475_vm13, %v477_v26, %v473_v28  ;;  %vm487_vm0 = vmor %vm485_vm15, %vm486_vm14 }
 0x199   :  { %v482_v30 = vsub.f32 1.0, %v481_v27  ;;  %606 = vmatmul.msk.f32.vlgmr.msra.gmra.mxu0 %vm403_vm1, %v478_v29 }
 0x19b   :  { %v483_v32 = vmul.f32 %v636_v25, %v482_v30 }
 0x19d   :  { %v484_v34 = vadd.f32 %v636_v25, %v483_v32 }
 0x19f   :  { %v488_v36 = vsel %vm487_vm0, %v636_v25, %v484_v34 }
 0x1a0   :  { %v493_v37 = vsel %vm490_vm2, %v492_v35, %v488_v36 }
 0x1a1   :  { %607 = vmatmul.msk.f32.vlgmr.msra.gmra.mxu1 %vm403_vm1, %v493_v37 }
 0x216   :  { %v526_v38 = vpop.f32.mrf.mxu0 }
 0x217   :  { %v533_v39 = vsel %vm532_vm3, %v526_v38, -inf }
 0x218   :  { %534 = vmax.xlane.f32.xlu0 %v533_v39 }
 0x21e   :  { %v529_v40 = vpop.f32.mrf.mxu1 }
 0x21f   :  { %v536_v41 = vsel %vm532_vm3, %v529_v40, -inf }
 0x220   :  { %537 = vmax.xlane.f32.xlu0 %v536_v41 }
 0x28b   :  { %v535_v42 = vpop.xlane.xlu0 %534 }
 0x28c   :  { %v539_v43 = vsub.f32 %v526_v38, %v535_v42 }
 0x28e   :  { %v541_v44 = vmul.f32 1.442695, %v539_v43 }
 0x290   :  { %637 = vpow2.f32 %v541_v44 }
 0x293   :  { %v538_v45 = vpop.xlane.xlu0 %537 }
 0x294   :  { %v540_v46 = vsub.f32 %v529_v40, %v538_v45 }
 0x296   :  { %v638_v47 = vpop.eup %637  ;;  %v543_v48 = vmul.f32 1.442695, %v540_v46 }
 0x297   :  { %v545_v49 = vsel %vm532_vm3, %v638_v47, 0.0 }
 0x298   :  { %639 = vpow2.f32 %v543_v48  ;;  %546 = vadd.xlane.f32.xlu1 %v545_v49 }
 0x29e   :  { %v640_v50 = vpop.eup %639 }
 0x29f   :  { %v548_v51 = vsel %vm532_vm3, %v640_v50, 0.0 }
 0x2a0   :  { %549 = vadd.xlane.f32.xlu1 %v548_v51 }
 0x30b   :  { %v547_v52 = vpop.xlane.xlu1 %546 }
 0x30c   :  { %641 = vlog2.f32 %v547_v52 }
 0x312   :  { %v642_v53 = vpop.eup %641 }
 0x313   :  { %v552_v54 = vmul.f32 0.6931472, %v642_v53  ;;  %v550_v55 = vpop.xlane.xlu1 %549 }
 0x314   :  { %643 = vlog2.f32 %v550_v55 }
 0x315   :  { %v555_v56 = vsub.f32 %v539_v43, %v552_v54 }
 0x317   :  { %557 = vst.msk [vmem:[#allocation10] sm:$0xff] %vm532_vm3, %v555_v56 }
 0x31a   :  { %v644_v57 = vpop.eup %643 }
 0x31b   :  { %v554_v58 = vmul.f32 0.6931472, %v644_v57 }
 0x31d   :  { %v556_v59 = vsub.f32 %v540_v46, %v554_v58 }
 0x31f   :  { %558 = vst.msk [vmem:[#allocation10 + $0x8] sm:$0xff] %vm532_vm3, %v556_v59 }
 0x320   :  { %571 = dma.vmem_to_hbm [thread:$0]  %s564_s20, 256, %s566_s23, [#allocation4], %s778_s15, %s778_s15, %s779_s16  }
 0x321   :  { %771 = dma.done.wait [#allocation4], 256  }
 0x322   :  { %772 = vsyncadd [#allocation4], 4294967040 }
 0x323   :  { %576 = vsyncpa [#allocation3], 1 }
 0x324   :  { %577 = vsyncpa [#allocation6], 1 }
 0x325   :  { %578 = vsyncpa [#allocation9], 1 }
 0x326   :  { %579 = vsyncpa [#allocation4], 1 }

</bundles_post_ra>
